<compile_context>
chip_gen: v7x
topology: tpu7x:2x2x1
jax: 0.10.0
libtpu: 0.0.40
codegen_flags: <defaults>
</compile_context>

<pallas_src>
import functools

import jax
import jax.numpy as jnp
from jax.experimental import pallas as pl
from jax.experimental.pallas import tpu as pltpu


NEG_SLOPE = 0.01   # nn.LeakyReLU default
FOLD = 4           # logical rows packed per lane-dense row (4 * 32 = 128 lanes)


def _leaky_relu(x):
    return jnp.where(x > 0, x, NEG_SLOPE * x)


def _round_up(n, m):
    return ((n + m - 1) // m) * m


def titanic_kernel(x_ref, w1_ref, b1_ref, w2_ref, b2_ref, w3_ref, b3_ref, o_ref):
    # Fused, 4-row-folded 3-layer MLP on one batch tile.
    #   x_ref : (tile_r, 32)   -- 4 logical rows x 8 features per folded row (f32)
    #   w*_ref: 4-way block-diagonal weights, bf16 (VMEM resident)
    #   b*_ref: biases tiled 4x along lanes, f32
    #   o_ref : (tile_r, 128)  -- 4 logical rows x 32 outputs per folded row (f32)
    x = x_ref[...].astype(jnp.bfloat16)

    h1 = jnp.dot(x, w1_ref[...], preferred_element_type=jnp.float32) + b1_ref[...]
    h1 = _leaky_relu(h1)
    # dropout1: identity in eval mode

    h2 = jnp.dot(h1.astype(jnp.bfloat16), w2_ref[...],
                 preferred_element_type=jnp.float32) + b2_ref[...]
    h2 = _leaky_relu(h2)
    # dropout2: identity in eval mode

    h3 = jnp.dot(h2.astype(jnp.bfloat16), w3_ref[...],
                 preferred_element_type=jnp.float32) + b3_ref[...]
    o_ref[...] = _leaky_relu(h3).astype(o_ref.dtype)


def _fold_weight(w):
    # block_diag(w, w, w, w) == kron(eye(4), w); makes each folded row compute
    # 4 independent logical rows so the output lands lane-dense.
    return jnp.kron(jnp.eye(FOLD, dtype=w.dtype), w).astype(jnp.bfloat16)


def _fold_bias(b):
    return jnp.tile(b, (1, FOLD)).astype(jnp.float32)


@jax.jit
def titanic_forward(x, params):
    """x: [B, 8] float32 -> [B, 32] float32 (Titanic.forward, eval mode)."""
    w1, b1, w2, b2, w3, b3 = params
    B = x.shape[0]

    w1f, w2f, w3f = _fold_weight(w1), _fold_weight(w2), _fold_weight(w3)
    b1f, b2f, b3f = _fold_bias(b1), _fold_bias(b2), _fold_bias(b3)

    # Batch tiling: even split of B into >=2 tiles (when B allows) so the
    # "parallel" batch axis shards across both v7x TensorCores and the pipeline
    # has >=2 stages; tile_b is a multiple of 32 so tile_r = tile_b/4 is
    # sublane-aligned.  Per-tile VMEM (x/out double buffers + f32 intermediates
    # + bf16 weights) stays well under the default scoped VMEM on v5e/v6e/v7x.
    target_rows = 2048 if B >= 8192 else 1024
    grid_n = max(1, min(pl.cdiv(B, 32), max(2, pl.cdiv(B, target_rows))))
    tile_b = _round_up(pl.cdiv(B, grid_n), 32)
    b_pad = tile_b * grid_n
    tile_r = tile_b // FOLD
    r_pad = b_pad // FOLD

    if b_pad != B:
        x = jnp.pad(x, ((0, b_pad - B), (0, 0)))
    x_folded = x.reshape(r_pad, 8 * FOLD)            # free row-major view

    def resident(shape):
        # Constant block index -> stays in VMEM across all grid steps.
        return pl.BlockSpec(shape, lambda i: (0, 0))

    param_bytes = ((w1f.size + w2f.size + w3f.size) * 2
                   + (b1f.size + b2f.size + b3f.size) * 4)
    cost = pl.CostEstimate(
        flops=2 * r_pad * (32 * 512 + 512 * 256 + 256 * 128),
        transcendentals=0,
        # folded x is 32-of-128 lanes (4x lane padding in VMEM); out is dense.
        bytes_accessed=r_pad * 128 * 4 * 2 + param_bytes,
    )

    out = pl.pallas_call(
        titanic_kernel,
        out_shape=jax.ShapeDtypeStruct((r_pad, 32 * FOLD), jnp.float32),
        grid=(grid_n,),
        in_specs=[
            pl.BlockSpec((tile_r, 8 * FOLD), lambda i: (i, 0)),   # folded x
            resident((8 * FOLD, 128 * FOLD)),                     # w1 blockdiag
            resident((1, 128 * FOLD)),                            # b1 tiled
            resident((128 * FOLD, 64 * FOLD)),                    # w2 blockdiag
            resident((1, 64 * FOLD)),                             # b2 tiled
            resident((64 * FOLD, 32 * FOLD)),                     # w3 blockdiag
            resident((1, 32 * FOLD)),                             # b3 tiled
        ],
        out_specs=pl.BlockSpec((tile_r, 32 * FOLD), lambda i: (i, 0)),
        compiler_params=pltpu.CompilerParams(
            dimension_semantics=("parallel",),   # shard batch grid across TCs
        ),
        cost_estimate=cost,
    )(x_folded, w1f, b1f, w2f, b2f, w3f, b3f)

    out = out.reshape(b_pad, 32)                     # free row-major view
    return out[:B] if b_pad != B else out


def init_params(key):
    """Deterministic init mimicking PyTorch Linear default (U[-1/sqrt(fan_in), +])."""

    def linear(key, fan_in, fan_out):
        kw, kb = jax.random.split(key)
        bound = 1.0 / (fan_in ** 0.5)
        w = jax.random.uniform(kw, (fan_in, fan_out), jnp.float32, -bound, bound)
        b = jax.random.uniform(kb, (1, fan_out), jnp.float32, -bound, bound)
        return w, b

    k1, k2, k3 = jax.random.split(key, 3)
    w1, b1 = linear(k1, 8, 128)
    w2, b2 = linear(k2, 128, 64)
    w3, b3 = linear(k3, 64, 32)
    return (w1, b1, w2, b2, w3, b3)


def _reference_f32(x, params):
    w1, b1, w2, b2, w3, b3 = params
    h = _leaky_relu(x @ w1 + b1)
    h = _leaky_relu(h @ w2 + b2)
    return _leaky_relu(h @ w3 + b3)


def _reference_bf16(x, params):
    # Quantization-matched reference (bf16 MXU operands, f32 accumulate).
    w1, b1, w2, b2, w3, b3 = params

    def layer(h, w, b):
        y = jnp.dot(h.astype(jnp.bfloat16), w.astype(jnp.bfloat16),
                    preferred_element_type=jnp.float32) + b
        return _leaky_relu(y)

    return layer(layer(layer(x, w1, b1), w2, b2), w3, b3)


if __name__ == "__main__":
    key = jax.random.PRNGKey(0)
    kx, kp = jax.random.split(key)
    params = init_params(kp)

    # Small shapes; B=13 exercises the ragged-pad path, B=200 a 2-step grid.
    for B in (16, 13, 200):
        x = jax.random.normal(jax.random.fold_in(kx, B), (B, 8), dtype=jnp.float32)
        out = titanic_forward(x, params)
        jax.block_until_ready(out)

        assert out.shape == (B, 32)
        ref_q = _reference_bf16(x, params)
        ref_f = _reference_f32(x, params)
        assert jnp.allclose(out, ref_q, atol=2e-3, rtol=2e-3), "mismatch vs bf16 ref"
        assert jnp.allclose(out, ref_f, atol=5e-2, rtol=5e-2), "mismatch vs f32 ref"

    print("KERNEL_OK")
</pallas_src>

<mosaic_0001>
module attributes {stable_mosaic.version = 11 : i64} {
  func.func @titanic_kernel(%arg0: i32, %arg1: memref<8x32xf32, #tpu.memory_space<vmem>>, %arg2: memref<32x512xbf16, #tpu.memory_space<vmem>>, %arg3: memref<1x512xf32, #tpu.memory_space<vmem>>, %arg4: memref<512x256xbf16, #tpu.memory_space<vmem>>, %arg5: memref<1x256xf32, #tpu.memory_space<vmem>>, %arg6: memref<256x128xbf16, #tpu.memory_space<vmem>>, %arg7: memref<1x128xf32, #tpu.memory_space<vmem>>, %arg8: memref<8x128xf32, #tpu.memory_space<vmem>>) attributes {dimension_semantics = [#tpu.dimension_semantics<parallel>], iteration_bounds = array<i64: 1>, scalar_prefetch = 0 : i64, scratch_operands = 0 : i64, tpu.core_type = #tpu.core_type<tc>, window_params = [{transform_indices = @transform_0, window_bounds = array<i64: 8, 32>}, {pipeline_mode = #tpu.pipeline_mode<synchronous>, transform_indices = @transform_1, window_bounds = array<i64: 32, 512>}, {pipeline_mode = #tpu.pipeline_mode<synchronous>, transform_indices = @transform_2, window_bounds = array<i64: 1, 512>}, {pipeline_mode = #tpu.pipeline_mode<synchronous>, transform_indices = @transform_3, window_bounds = array<i64: 512, 256>}, {pipeline_mode = #tpu.pipeline_mode<synchronous>, transform_indices = @transform_4, window_bounds = array<i64: 1, 256>}, {pipeline_mode = #tpu.pipeline_mode<synchronous>, transform_indices = @transform_5, window_bounds = array<i64: 256, 128>}, {pipeline_mode = #tpu.pipeline_mode<synchronous>, transform_indices = @transform_6, window_bounds = array<i64: 1, 128>}, {transform_indices = @transform_7, window_bounds = array<i64: 8, 128>}]} {
    %c0 = arith.constant 0 : index
    %c0_0 = arith.constant 0 : index
    %0 = vector.load %arg1[%c0, %c0_0] : memref<8x32xf32, #tpu.memory_space<vmem>>, vector<8x32xf32>
    %1 = arith.truncf %0 : vector<8x32xf32> to vector<8x32xbf16>
    %c0_1 = arith.constant 0 : index
    %c0_2 = arith.constant 0 : index
    %2 = vector.load %arg2[%c0_1, %c0_2] : memref<32x512xbf16, #tpu.memory_space<vmem>>, vector<32x512xbf16>
    %cst = arith.constant dense<0.000000e+00> : vector<8x512xf32>
    %3 = tpu.matmul %1, %2, %cst {dimension_numbers = #tpu.dot_dimension_numbers<[1], [0], [0], [1], [0, 0, 1, 1], [], []>} : vector<8x32xbf16>, vector<32x512xbf16>, vector<8x512xf32> -> vector<8x512xf32>
    %c0_3 = arith.constant 0 : index
    %c0_4 = arith.constant 0 : index
    %4 = vector.load %arg3[%c0_3, %c0_4] : memref<1x512xf32, #tpu.memory_space<vmem>>, vector<1x512xf32>
    %5 = vector.broadcast %4 : vector<1x512xf32> to vector<8x512xf32>
    %6 = arith.addf %3, %5 : vector<8x512xf32>
    %cst_5 = arith.constant 0.000000e+00 : f32
    %7 = vector.broadcast %cst_5 : f32 to vector<8x512xf32>
    %8 = arith.cmpf ogt, %6, %7 : vector<8x512xf32>
    %cst_6 = arith.constant 0.00999999977 : f32
    %9 = vector.broadcast %cst_6 : f32 to vector<8x512xf32>
    %10 = arith.mulf %9, %6 : vector<8x512xf32>
    %11 = arith.select %8, %6, %10 : vector<8x512xi1>, vector<8x512xf32>
    %12 = arith.truncf %11 : vector<8x512xf32> to vector<8x512xbf16>
    %c0_7 = arith.constant 0 : index
    %c0_8 = arith.constant 0 : index
    %13 = vector.load %arg4[%c0_7, %c0_8] : memref<512x256xbf16, #tpu.memory_space<vmem>>, vector<512x256xbf16>
    %cst_9 = arith.constant dense<0.000000e+00> : vector<8x256xf32>
    %14 = tpu.matmul %12, %13, %cst_9 {dimension_numbers = #tpu.dot_dimension_numbers<[1], [0], [0], [1], [0, 0, 1, 1], [], []>} : vector<8x512xbf16>, vector<512x256xbf16>, vector<8x256xf32> -> vector<8x256xf32>
    %c0_10 = arith.constant 0 : index
    %c0_11 = arith.constant 0 : index
    %15 = vector.load %arg5[%c0_10, %c0_11] : memref<1x256xf32, #tpu.memory_space<vmem>>, vector<1x256xf32>
    %16 = vector.broadcast %15 : vector<1x256xf32> to vector<8x256xf32>
    %17 = arith.addf %14, %16 : vector<8x256xf32>
    %cst_12 = arith.constant 0.000000e+00 : f32
    %18 = vector.broadcast %cst_12 : f32 to vector<8x256xf32>
    %19 = arith.cmpf ogt, %17, %18 : vector<8x256xf32>
    %cst_13 = arith.constant 0.00999999977 : f32
    %20 = vector.broadcast %cst_13 : f32 to vector<8x256xf32>
    %21 = arith.mulf %20, %17 : vector<8x256xf32>
    %22 = arith.select %19, %17, %21 : vector<8x256xi1>, vector<8x256xf32>
    %23 = arith.truncf %22 : vector<8x256xf32> to vector<8x256xbf16>
    %c0_14 = arith.constant 0 : index
    %c0_15 = arith.constant 0 : index
    %24 = vector.load %arg6[%c0_14, %c0_15] : memref<256x128xbf16, #tpu.memory_space<vmem>>, vector<256x128xbf16>
    %cst_16 = arith.constant dense<0.000000e+00> : vector<8x128xf32>
    %25 = tpu.matmul %23, %24, %cst_16 {dimension_numbers = #tpu.dot_dimension_numbers<[1], [0], [0], [1], [0, 0, 1, 1], [], []>} : vector<8x256xbf16>, vector<256x128xbf16>, vector<8x128xf32> -> vector<8x128xf32>
    %c0_17 = arith.constant 0 : index
    %c0_18 = arith.constant 0 : index
    %26 = vector.load %arg7[%c0_17, %c0_18] : memref<1x128xf32, #tpu.memory_space<vmem>>, vector<1x128xf32>
    %27 = vector.broadcast %26 : vector<1x128xf32> to vector<8x128xf32>
    %28 = arith.addf %25, %27 : vector<8x128xf32>
    %cst_19 = arith.constant 0.000000e+00 : f32
    %29 = vector.broadcast %cst_19 : f32 to vector<8x128xf32>
    %30 = arith.cmpf ogt, %28, %29 : vector<8x128xf32>
    %cst_20 = arith.constant 0.00999999977 : f32
    %31 = vector.broadcast %cst_20 : f32 to vector<8x128xf32>
    %32 = arith.mulf %31, %28 : vector<8x128xf32>
    %33 = arith.select %30, %28, %32 : vector<8x128xi1>, vector<8x128xf32>
    %c0_21 = arith.constant 0 : index
    %c0_22 = arith.constant 0 : index
    %34 = vector.load %arg8[%c0_21, %c0_22] : memref<8x128xf32, #tpu.memory_space<vmem>>, vector<8x128xf32>
    tpu.vector_store %arg8[%c0_21, %c0_22], %33 {strides = array<i32>} : memref<8x128xf32, #tpu.memory_space<vmem>>, vector<8x128xf32>,
    return
  }
  func.func @transform_0(%arg0: i32) -> (i32, i32) {
    %c0_i32 = arith.constant 0 : i32
    %c0_i32_0 = arith.constant 0 : i32
    return %arg0, %c0_i32 : i32, i32
  }
  func.func @transform_1(%arg0: i32) -> (i32, i32) {
    %c0_i32 = arith.constant 0 : i32
    %c0_i32_0 = arith.constant 0 : i32
    %c0_i32_1 = arith.constant 0 : i32
    return %c0_i32, %c0_i32_0 : i32, i32
  }
  func.func @transform_2(%arg0: i32) -> (i32, i32) {
    %c0_i32 = arith.constant 0 : i32
    %c0_i32_0 = arith.constant 0 : i32
    %c0_i32_1 = arith.constant 0 : i32
    return %c0_i32, %c0_i32_0 : i32, i32
  }
  func.func @transform_3(%arg0: i32) -> (i32, i32) {
    %c0_i32 = arith.constant 0 : i32
    %c0_i32_0 = arith.constant 0 : i32
    %c0_i32_1 = arith.constant 0 : i32
    return %c0_i32, %c0_i32_0 : i32, i32
  }
  func.func @transform_4(%arg0: i32) -> (i32, i32) {
    %c0_i32 = arith.constant 0 : i32
    %c0_i32_0 = arith.constant 0 : i32
    %c0_i32_1 = arith.constant 0 : i32
    return %c0_i32, %c0_i32_0 : i32, i32
  }
  func.func @transform_5(%arg0: i32) -> (i32, i32) {
    %c0_i32 = arith.constant 0 : i32
    %c0_i32_0 = arith.constant 0 : i32
    %c0_i32_1 = arith.constant 0 : i32
    return %c0_i32, %c0_i32_0 : i32, i32
  }
  func.func @transform_6(%arg0: i32) -> (i32, i32) {
    %c0_i32 = arith.constant 0 : i32
    %c0_i32_0 = arith.constant 0 : i32
    %c0_i32_1 = arith.constant 0 : i32
    return %c0_i32, %c0_i32_0 : i32, i32
  }
  func.func @transform_7(%arg0: i32) -> (i32, i32) {
    %c0_i32 = arith.constant 0 : i32
    %c0_i32_0 = arith.constant 0 : i32
    return %arg0, %c0_i32 : i32, i32
  }
}

</mosaic_0001>

<bundles_post_ra>
// kernel: titanic_forward.1
= control target key start
LH: loop header
LB: loop body
LE: loop exit
PB: predicated region body
PF: predicated region fallthrough
CT: control target
= control target key end

     0   :  { %v1112_v1 = vmov 0   ;;  %vm99_vm0 = vcmask 261120   ;;  %s1448_s1 = inlined_call_operand.vmem [shape: bf16[32,512], index: 1, kind: input, shape index: {}]   ;;  %s1449_s0 = inlined_call_operand.vmem [shape: f32[8,32], index: 0, kind: input, shape index: {}]   ;;  %s1450_s3 = inlined_call_operand.vmem [shape: bf16[512,256], index: 3, kind: input, shape index: {}]   ;;  %s1451_s5 = inlined_call_operand.vmem [shape: bf16[256,128], index: 5, kind: input, shape index: {}]   ;;  %s1452_s2 = inlined_call_operand.vmem [shape: f32[1,512], index: 2, kind: input, shape index: {}]   ;;  %s1453_s4 = inlined_call_operand.vmem [shape: f32[1,256], index: 4, kind: input, shape index: {}]   ;;  %s1454_s6 = inlined_call_operand.vmem [shape: f32[1,128], index: 6, kind: input, shape index: {}]   ;;  %s1455_s7 = inlined_call_operand.vmem [shape: f32[8,128], index: 7, kind: output, shape index: {}]  }
   0x1   :  { %v988_v0 = vld [vmem:[%s1448_s1 + $0x4] ss:$16 sps:$4 sm:$0xff]   ;;  %135 = vmatprep.mubr.bf16.mxu0 %v1112_v1  ;;  %v990_v2 = vld [vmem:[%s1448_s1] ss:$16 sps:$4 sm:$0xff]   ;;  %v996_v6 = vld [vmem:[%s1448_s1 + $0xc] ss:$16 sps:$4 sm:$0xff]  }
   0x2   :  { %103 = vmatprep.subr.bf16.mxu0 %v988_v0  ;;  %v991_v3 = vld [vmem:[%s1448_s1 + $0x24] ss:$16 sps:$4 sm:$0xff]   ;;  %v993_v4 = vld [vmem:[%s1448_s1 + $0x20] ss:$16 sps:$4 sm:$0xff]   ;;  %v994_v7 = vld [vmem:[%s1448_s1 + $0x8] ss:$16 sps:$4 sm:$0xff]  }
   0x3   :  { %104 = vmatpush1.bf16.msra.mxu0 %v990_v2  ;;  %v27_v5 = vld [vmem:[%s1449_s0] sm:$0xff]  ;;  %v1003_v11 = vld [vmem:[%s1450_s3 + $0x14] ss:$8 sps:$4 sm:$0xff]   ;;  %v1005_v13 = vld [vmem:[%s1450_s3 + $0x10] ss:$8 sps:$4 sm:$0xff]  }
   0x4   :  { %105 = vmatprep.subr.bf16.mxu0 %v991_v3  ;;  %v28_v8 = vpack.c.bf16 %v27_v5, %v27_v5  ;;  %v1000_v9 = vld [vmem:[%s1450_s3 + $0x4] ss:$8 sps:$4 sm:$0xff]   ;;  %v1002_v10 = vld [vmem:[%s1450_s3] ss:$8 sps:$4 sm:$0xff]   ;;  %v1012_v18 = vld [vmem:[%s1450_s3 + $0x34] ss:$8 sps:$4 sm:$0xff]  }
   0x5   :  { %v999_v12 = vld [vmem:[%s1448_s1 + $0x2c] ss:$16 sps:$4 sm:$0xff]   ;;  %597 = vmatprep.subr.bf16.mxu1 %v1000_v9  ;;  %v997_v15 = vld [vmem:[%s1448_s1 + $0x28] ss:$16 sps:$4 sm:$0xff]  }
   0x6   :  { %598 = vmatpush1.bf16.msra.mxu1 %v1002_v10  ;;  %v1006_v14 = vld [vmem:[%s1450_s3 + $0x24] ss:$8 sps:$4 sm:$0xff]   ;;  %v1011_v17 = vld [vmem:[%s1450_s3 + $0x20] ss:$8 sps:$4 sm:$0xff]   ;;  %v1016_v20 = vld [vmem:[%s1450_s3 + $0x114] ss:$8 sps:$4 sm:$0xff]  }
   0x7   :  { %106 = vmatpush1.bf16.msra.mxu0 %v993_v4  ;;  %599 = vmatprep.subr.bf16.mxu1 %v1003_v11  ;;  %v1010_v16 = vld [vmem:[%s1450_s3 + $0x104] ss:$8 sps:$4 sm:$0xff]   ;;  %v1008_v19 = vld [vmem:[%s1450_s3 + $0x100] ss:$8 sps:$4 sm:$0xff]   ;;  %v1017_v21 = vld [vmem:[%s1450_s3 + $0x30] ss:$8 sps:$4 sm:$0xff]  }
   0x8   :  { %144 = vmatprep.subr.bf16.mxu0 %v996_v6  ;;  %v1018_v22 = vld [vmem:[%s1450_s3 + $0x44] ss:$8 sps:$4 sm:$0xff]   ;;  %v1014_v23 = vld [vmem:[%s1450_s3 + $0x110] ss:$8 sps:$4 sm:$0xff]   ;;  %v1023_v25 = vld [vmem:[%s1450_s3 + $0x40] ss:$8 sps:$4 sm:$0xff]  }
   0x9   :  { %v1022_v24 = vld [vmem:[%s1450_s3 + $0x124] ss:$8 sps:$4 sm:$0xff]   ;;  %v1024_v26 = vld [vmem:[%s1450_s3 + $0x54] ss:$8 sps:$4 sm:$0xff]   ;;  %v1020_v27 = vld [vmem:[%s1450_s3 + $0x120] ss:$8 sps:$4 sm:$0xff]  }
   0xa   :  { %878 = vmatmul.mubr.msk.bf16.vlgmr.msra.gmra.mrb[0].mxu0 %vm99_vm0, %v28_v8  ;;  %600 = vmatpush1.bf16.msra.mxu1 %v1005_v13  ;;  %v1028_v28 = vld [vmem:[%s1450_s3 + $0x134] ss:$8 sps:$4 sm:$0xff]   ;;  %v1029_v29 = vld [vmem:[%s1450_s3 + $0x50] ss:$8 sps:$4 sm:$0xff]   ;;  %v1030_v30 = vld [vmem:[%s1450_s3 + $0x64] ss:$8 sps:$4 sm:$0xff]  }
   0xb   :  { %145 = vmatpush1.bf16.msra.mxu0 %v994_v7  ;;  %176 = vmatprep.mubr.bf16.mxu0 %v1112_v1  ;;  %v1026_v31 = vld [vmem:[%s1450_s3 + $0x130] ss:$8 sps:$4 sm:$0xff]   ;;  %v1034_v32 = vld [vmem:[%s1450_s3 + $0x144] ss:$8 sps:$4 sm:$0xff]   ;;  %v1035_v33 = vld [vmem:[%s1450_s3 + $0x60] ss:$8 sps:$4 sm:$0xff]  }
   0xc   :  { %146 = vmatprep.subr.bf16.mxu0 %v999_v12  ;;  %601 = vmatprep.subr.bf16.mxu1 %v1006_v14  ;;  %v1036_v34 = vld [vmem:[%s1450_s3 + $0x74] ss:$8 sps:$4 sm:$0xff]   ;;  %v1032_v35 = vld [vmem:[%s1450_s3 + $0x140] ss:$8 sps:$4 sm:$0xff]   ;;  %v1041_v37 = vld [vmem:[%s1450_s3 + $0x70] ss:$8 sps:$4 sm:$0xff]   ;;  %v39_v12 = vlaneseq }
   0xd   :  { %v1040_v36 = vld [vmem:[%s1450_s3 + $0x154] ss:$8 sps:$4 sm:$0xff]   ;;  %v1042_v38 = vld [vmem:[%s1450_s3 + $0x84] ss:$8 sps:$4 sm:$0xff]   ;;  %v1038_v39 = vld [vmem:[%s1450_s3 + $0x150] ss:$8 sps:$4 sm:$0xff]  }
   0xe   :  { %602 = vmatpush1.bf16.msra.mxu1 %v1011_v17  ;;  %v1046_v40 = vld [vmem:[%s1450_s3 + $0x164] ss:$8 sps:$4 sm:$0xff]   ;;  %v1047_v41 = vld [vmem:[%s1450_s3 + $0x80] ss:$8 sps:$4 sm:$0xff]   ;;  %v1048_v42 = vld [vmem:[%s1450_s3 + $0x94] ss:$8 sps:$4 sm:$0xff]  }
   0xf   :  { %147 = vmatpush1.bf16.msra.mxu0 %v997_v15  ;;  %603 = vmatprep.subr.bf16.mxu1 %v1012_v18  ;;  %v1044_v43 = vld [vmem:[%s1450_s3 + $0x160] ss:$8 sps:$4 sm:$0xff]   ;;  %v1052_v44 = vld [vmem:[%s1450_s3 + $0x174] ss:$8 sps:$4 sm:$0xff]   ;;  %v1053_v45 = vld [vmem:[%s1450_s3 + $0x90] ss:$8 sps:$4 sm:$0xff]  }
  0x10   :  { %638 = vmatprep.subr.bf16.mxu0 %v1010_v16  ;;  %v1054_v46 = vld [vmem:[%s1450_s3 + $0xa4] ss:$8 sps:$4 sm:$0xff]   ;;  %v1050_v47 = vld [vmem:[%s1450_s3 + $0x170] ss:$8 sps:$4 sm:$0xff]   ;;  %v1059_v49 = vld [vmem:[%s1450_s3 + $0xa0] ss:$8 sps:$4 sm:$0xff]  }
  0x11   :  { %v1058_v48 = vld [vmem:[%s1450_s3 + $0x184] ss:$8 sps:$4 sm:$0xff]   ;;  %v1060_v50 = vld [vmem:[%s1450_s3 + $0xb4] ss:$8 sps:$4 sm:$0xff]   ;;  %v1056_v51 = vld [vmem:[%s1450_s3 + $0x180] ss:$8 sps:$4 sm:$0xff]  }
  0x12   :  { %879 = vmatmul.mubr.msk.bf16.vlgmr.msra.gmra.mrb[4].mxu0 %vm99_vm0, %v28_v8  ;;  %604 = vmatpush1.bf16.msra.mxu1 %v1017_v21  ;;  %v1064_v52 = vld [vmem:[%s1450_s3 + $0x194] ss:$8 sps:$4 sm:$0xff]   ;;  %v1065_v53 = vld [vmem:[%s1450_s3 + $0xb0] ss:$8 sps:$4 sm:$0xff]   ;;  %v1066_v54 = vld [vmem:[%s1450_s3 + $0xc4] ss:$8 sps:$4 sm:$0xff]  }
  0x13   :  { %639 = vmatpush1.bf16.msra.mxu0 %v1008_v19  ;;  %605 = vmatprep.subr.bf16.mxu1 %v1018_v22  ;;  %v1062_v55 = vld [vmem:[%s1450_s3 + $0x190] ss:$8 sps:$4 sm:$0xff]   ;;  %v1070_v56 = vld [vmem:[%s1450_s3 + $0x1a4] ss:$8 sps:$4 sm:$0xff]   ;;  %v1071_v57 = vld [vmem:[%s1450_s3 + $0xc0] ss:$8 sps:$4 sm:$0xff]  }
  0x14   :  { %640 = vmatprep.subr.bf16.mxu0 %v1016_v20  ;;  %v1072_v58 = vld [vmem:[%s1450_s3 + $0xd4] ss:$8 sps:$4 sm:$0xff]   ;;  %v1068_v59 = vld [vmem:[%s1450_s3 + $0x1a0] ss:$8 sps:$4 sm:$0xff]   ;;  %v1077_v61 = vld [vmem:[%s1450_s3 + $0xd0] ss:$8 sps:$4 sm:$0xff]  }
  0x15   :  { %v1076_v60 = vld [vmem:[%s1450_s3 + $0x1b4] ss:$8 sps:$4 sm:$0xff]   ;;  %v1074_v62 = vld [vmem:[%s1450_s3 + $0x1b0] ss:$8 sps:$4 sm:$0xff]   ;;  %v1078_v63 = vld [vmem:[%s1450_s3 + $0xe4] ss:$8 sps:$4 sm:$0xff]  }
  0x16   :  { %606 = vmatpush1.bf16.msra.mxu1 %v1023_v25  ;;  %v1082_v0 = vld [vmem:[%s1450_s3 + $0x1c4] ss:$8 sps:$4 sm:$0xff]   ;;  %v1080_v1 = vld [vmem:[%s1450_s3 + $0x1c0] ss:$8 sps:$4 sm:$0xff]   ;;  %v1084_v3 = vld [vmem:[%s1450_s3 + $0xf4] ss:$8 sps:$4 sm:$0xff]  }
  0x17   :  { %641 = vmatpush1.bf16.msra.mxu0 %v1014_v23  ;;  %607 = vmatprep.subr.bf16.mxu1 %v1024_v26  ;;  %v1083_v2 = vld [vmem:[%s1450_s3 + $0xe0] ss:$8 sps:$4 sm:$0xff]   ;;  %v1086_v4 = vld [vmem:[%s1450_s3 + $0x1d0] ss:$8 sps:$4 sm:$0xff]   ;;  %v1088_v5 = vld [vmem:[%s1450_s3 + $0x1d4] ss:$8 sps:$4 sm:$0xff]  }
  0x18   :  { %642 = vmatprep.subr.bf16.mxu0 %v1022_v24  ;;  %v1089_v6 = vld [vmem:[%s1450_s3 + $0xf0] ss:$8 sps:$4 sm:$0xff]   ;;  %v1092_v7 = vld [vmem:[%s1450_s3 + $0x1e4] ss:$8 sps:$4 sm:$0xff]   ;;  %v1090_v8 = vld [vmem:[%s1450_s3 + $0x1e0] ss:$8 sps:$4 sm:$0xff]  }
  0x19   :  { %v1095_v9 = vld [vmem:[%s1450_s3 + $0x1f4] ss:$8 sps:$4 sm:$0xff]   ;;  %v1093_v10 = vld [vmem:[%s1450_s3 + $0x1f0] ss:$8 sps:$4 sm:$0xff]   ;;  %v1096_v11 = vld [vmem:[%s1451_s5 + $0x40] sm:$0xff]   ;;  %v1377_v13 = vshrl.u32 %v39_v12, 7 }
  0x1a   :  { %608 = vmatpush1.bf16.msra.mxu1 %v1029_v29  ;;  %v37_v15 = vld [vmem:[%s1452_s2] sm:$0xf] }
  0x1b   :  { %643 = vmatpush1.bf16.msra.mxu0 %v1020_v27  ;;  %609 = vmatprep.subr.bf16.mxu1 %v1030_v30  ;;  %v41_v14 = vsub.s32 0, %v1377_v13  ;;  %v45_v16 = vsub.s32 1, %v1377_v13  ;;  %v49_v22 = vsub.s32 2, %v1377_v13  ;;  %v53_v25 = vsub.s32 3, %v1377_v13 }
  0x1c   :  { %644 = vmatprep.subr.bf16.mxu0 %v1028_v28 }
  0x1d   :  { %v42_v17 = vrot.slane %v37_v15, %v41_v14  ;;  %v46_v18 = vrot.slane %v37_v15, %v45_v16  ;;  %v50_v29 = vrot.slane %v37_v15, %v49_v22 }
  0x1e   :  { %610 = vmatpush1.bf16.msra.mxu1 %v1035_v33 }
  0x1f   :  { %645 = vmatpush1.bf16.msra.mxu0 %v1026_v31  ;;  %611 = vmatprep.subr.bf16.mxu1 %v1036_v34  ;;  %v54_v31 = vrot.slane %v37_v15, %v53_v25  ;;  %v1097_v34 = vld [vmem:[%s1451_s5] sm:$0xff]  }
  0x20   :  { %646 = vmatprep.subr.bf16.mxu0 %v1034_v32 }
  0x22   :  { %612 = vmatpush1.bf16.msra.mxu1 %v1041_v37  ;;  %v1098_v37 = vld [vmem:[%s1451_s5 + $0x48] sm:$0xff]  }
  0x23   :  { %647 = vmatpush1.bf16.msra.mxu0 %v1032_v35  ;;  %613 = vmatprep.subr.bf16.mxu1 %v1042_v38 }
  0x24   :  { %648 = vmatprep.subr.bf16.mxu0 %v1040_v36 }
  0x26   :  { %614 = vmatpush1.bf16.msra.mxu1 %v1047_v41 }
  0x27   :  { %649 = vmatpush1.bf16.msra.mxu0 %v1038_v39  ;;  %615 = vmatprep.subr.bf16.mxu1 %v1048_v42 }
  0x28   :  { %650 = vmatprep.subr.bf16.mxu0 %v1046_v40 }
  0x2a   :  { %616 = vmatpush1.bf16.msra.mxu1 %v1053_v45 }
  0x2b   :  { %651 = vmatpush1.bf16.msra.mxu0 %v1044_v43  ;;  %617 = vmatprep.subr.bf16.mxu1 %v1054_v46  ;;  %v1100_v46 = vld [vmem:[%s1451_s5 + $0x50] sm:$0xff]  }
  0x2c   :  { %652 = vmatprep.subr.bf16.mxu0 %v1052_v44  ;;  %v1099_v44 = vld [vmem:[%s1451_s5 + $0x8] sm:$0xff]  }
  0x2e   :  { %618 = vmatpush1.bf16.msra.mxu1 %v1059_v49 }
  0x2f   :  { %653 = vmatpush1.bf16.msra.mxu0 %v1050_v47  ;;  %619 = vmatprep.subr.bf16.mxu1 %v1060_v50  ;;  %v1101_v50 = vld [vmem:[%s1451_s5 + $0x10] sm:$0xff]  }
  0x30   :  { %654 = vmatprep.subr.bf16.mxu0 %v1058_v48 }
  0x32   :  { %620 = vmatpush1.bf16.msra.mxu1 %v1065_v53  ;;  %v1103_v53 = vld [vmem:[%s1451_s5 + $0x18] sm:$0xff]  }
  0x33   :  { %655 = vmatpush1.bf16.msra.mxu0 %v1056_v51  ;;  %621 = vmatprep.subr.bf16.mxu1 %v1066_v54  ;;  %v1104_v54 = vld [vmem:[%s1451_s5 + $0x60] sm:$0xff]  }
  0x34   :  { %656 = vmatprep.subr.bf16.mxu0 %v1064_v52  ;;  %v1102_v52 = vld [vmem:[%s1451_s5 + $0x58] sm:$0xff]  }
  0x36   :  { %622 = vmatpush1.bf16.msra.mxu1 %v1071_v57  ;;  %v1107_v57 = vld [vmem:[%s1451_s5 + $0x28] sm:$0xff]  }
  0x37   :  { %657 = vmatpush1.bf16.msra.mxu0 %v1062_v55  ;;  %623 = vmatprep.subr.bf16.mxu1 %v1072_v58  ;;  %v1105_v55 = vld [vmem:[%s1451_s5 + $0x20] sm:$0xff]   ;;  %v1108_v58 = vld [vmem:[%s1451_s5 + $0x70] sm:$0xff]  }
  0x38   :  { %658 = vmatprep.subr.bf16.mxu0 %v1070_v56  ;;  %v1106_v56 = vld [vmem:[%s1451_s5 + $0x68] sm:$0xff]  }
  0x3a   :  { %624 = vmatpush1.bf16.msra.mxu1 %v1077_v61  ;;  %v1111_v61 = vld [vmem:[%s1451_s5 + $0x38] sm:$0xff]  }
  0x3b   :  { %659 = vmatpush1.bf16.msra.mxu0 %v1068_v59  ;;  %625 = vmatprep.subr.bf16.mxu1 %v1078_v63  ;;  %v1109_v59 = vld [vmem:[%s1451_s5 + $0x30] sm:$0xff]  }
  0x3c   :  { %660 = vmatprep.subr.bf16.mxu0 %v1076_v60  ;;  %v1110_v60 = vld [vmem:[%s1451_s5 + $0x78] sm:$0xff]  }
  0x3e   :  { %626 = vmatpush1.bf16.msra.mxu1 %v1083_v2 }
  0x3f   :  { %661 = vmatpush1.bf16.msra.mxu0 %v1074_v62  ;;  %627 = vmatprep.subr.bf16.mxu1 %v1084_v3  ;;  %v265_v62 = vld [vmem:[%s1453_s4] sm:$0x3] }
  0x40   :  { %662 = vmatprep.subr.bf16.mxu0 %v1082_v0  ;;  %v270_v2 = vrot.slane %v265_v62, %v41_v14 }
  0x42   :  { %628 = vmatpush1.bf16.msra.mxu1 %v1089_v6 }
  0x43   :  { %663 = vmatpush1.bf16.msra.mxu0 %v1080_v1  ;;  %961 = vmatprep.subr.bf16.mxu1 %v1096_v11 }
  0x44   :  { %664 = vmatprep.subr.bf16.mxu0 %v1088_v5 }
  0x47   :  { %665 = vmatpush1.bf16.msra.mxu0 %v1086_v4  ;;  %v274_v4 = vrot.slane %v265_v62, %v45_v16  ;;  %v944_v16 = vld [vmem:[%s1454_s6] ss:$0 sm:$0xff] }
  0x48   :  { %666 = vmatprep.subr.bf16.mxu0 %v1092_v7 }
  0x4b   :  { %667 = vmatpush1.bf16.msra.mxu0 %v1090_v8 }
  0x4c   :  { %668 = vmatprep.subr.bf16.mxu0 %v1095_v9 }
  0x4f   :  { %669 = vmatpush1.bf16.msra.mxu0 %v1093_v10 }
  0xdd   :  { %v137_v19 = vpop.f32.mrb[0].mxu0 }
  0xde   :  { %v138_v20 = vadd.f32 %v137_v19, %v42_v17  ;;  %v139_v21 = vpop.f32.mrb[1].mxu0 }
  0xdf   :  { %v140_v23 = vadd.f32 %v139_v21, %v46_v18  ;;  %v141_v24 = vpop.f32.mrb[2].mxu0 }
  0xe0   :  { %vm185_vm1 = vcmp.gt.f32.partialorder %v138_v20, 0.0  ;;  %v189_v26 = vmul.f32 0.01, %v138_v20  ;;  %v142_v27 = vpop.f32.mrb[3].mxu0 }
  0xe1   :  { %vm186_vm2 = vcmp.gt.f32.partialorder %v140_v23, 0.0  ;;  %v190_v28 = vmul.f32 0.01, %v140_v23 }
  0xe2   :  { %v193_v30 = vsel %vm185_vm1, %v138_v20, %v189_v26 }
  0xe3   :  { %v194_v32 = vsel %vm186_vm2, %v140_v23, %v190_v28  ;;  %v197_v36 = vpack.c.bf16 %v193_v30, %v193_v30 }
  0xe4   :  { %v198_v33 = vpack.c.bf16 %v194_v32, %v194_v32 }
  0xe5   :  { %v178_v35 = vpop.f32.mrb[4].mxu0 }
  0xe6   :  { %v179_v38 = vadd.f32 %v178_v35, %v50_v29  ;;  %v180_v39 = vpop.f32.mrb[5].mxu0  ;;  %629 = vmatprep.mubr.bf16.mxu1 %v198_v33 }
  0xe7   :  { %v181_v40 = vadd.f32 %v180_v39, %v54_v31  ;;  %v182_v41 = vpop.f32.mrb[6].mxu0  ;;  %630 = vmatmul.mubr.bf16.vlgmr.msra.gmra.mrb[0].mxu1 %v197_v36 }
  0xe8   :  { %vm187_vm3 = vcmp.gt.f32.partialorder %v179_v38, 0.0  ;;  %v191_v42 = vmul.f32 0.01, %v179_v38  ;;  %v183_v43 = vpop.f32.mrb[7].mxu0  ;;  %962 = vmatpush3.bf16.msra.mxu1 %v1097_v34 }
  0xe9   :  { %vm188_vm4 = vcmp.gt.f32.partialorder %v181_v40, 0.0  ;;  %v192_v45 = vmul.f32 0.01, %v181_v40  ;;  %963 = vmatprep.subr.bf16.mxu1 %v1098_v37 }
  0xea   :  { %v195_v47 = vsel %vm187_vm3, %v179_v38, %v191_v42 }
  0xeb   :  { %v196_v48 = vsel %vm188_vm4, %v181_v40, %v192_v45  ;;  %v199_v51 = vpack.c.bf16 %v195_v47, %v195_v47 }
  0xec   :  { %v200_v49 = vpack.c.bf16 %v196_v48, %v196_v48  ;;  %964 = vmatpush3.bf16.msra.mxu1 %v1099_v44 }
  0xed   :  { %965 = vmatprep.subr.bf16.mxu1 %v1100_v46 }
  0xee   :  { %670 = vmatprep.mubr.bf16.mxu0 %v200_v49 }
  0xef   :  { %671 = vmatmul.mubr.bf16.vlgmr.msra.gmra.mrb[8].mxu0 %v199_v51 }
  0xf0   :  { %966 = vmatpush3.bf16.msra.mxu1 %v1101_v50 }
  0xf1   :  { %967 = vmatprep.subr.bf16.mxu1 %v1102_v52 }
  0xf4   :  { %968 = vmatpush3.bf16.msra.mxu1 %v1103_v53 }
  0xf5   :  { %969 = vmatprep.subr.bf16.mxu1 %v1104_v54 }
  0xf8   :  { %970 = vmatpush3.bf16.msra.mxu1 %v1105_v55 }
  0xf9   :  { %971 = vmatprep.subr.bf16.mxu1 %v1106_v56 }
  0xfc   :  { %972 = vmatpush3.bf16.msra.mxu1 %v1107_v57 }
  0xfd   :  { %973 = vmatprep.subr.bf16.mxu1 %v1108_v58 }
 0x100   :  { %974 = vmatpush3.bf16.msra.mxu1 %v1109_v59 }
 0x101   :  { %975 = vmatprep.subr.bf16.mxu1 %v1110_v60 }
 0x104   :  { %976 = vmatpush3.bf16.msra.mxu1 %v1111_v61 }
 0x1ba   :  { %v631_v63 = vpop.f32.mrb[0].mxu1 }
 0x1bb   :  { %v633_v0 = vpop.f32.mrb[1].mxu1  ;;  %v632_v5 = vadd.f32 %v631_v63, %v270_v2 }
 0x1bc   :  { %v635_v1 = vpop.f32.mrb[2].mxu1  ;;  %v634_v6 = vadd.f32 %v633_v0, %v274_v4 }
 0x1bd   :  { %v636_v3 = vpop.f32.mrb[3].mxu1 }
 0x1c2   :  { %v672_v7 = vpop.f32.mrb[8].mxu0 }
 0x1c3   :  { %v673_v8 = vadd.f32 %v672_v7, %v632_v5  ;;  %v674_v9 = vpop.f32.mrb[9].mxu0 }
 0x1c4   :  { %v675_v10 = vadd.f32 %v674_v9, %v634_v6  ;;  %v676_v11 = vpop.f32.mrb[10].mxu0 }
 0x1c5   :  { %vm679_vm5 = vcmp.gt.f32.partialorder %v673_v8, 0.0  ;;  %v681_v12 = vmul.f32 0.01, %v673_v8  ;;  %v677_v15 = vpop.f32.mrb[11].mxu0 }
 0x1c6   :  { %vm680_vm6 = vcmp.gt.f32.partialorder %v675_v10, 0.0  ;;  %v682_v17 = vmul.f32 0.01, %v675_v10 }
 0x1c7   :  { %v683_v18 = vsel %vm679_vm5, %v673_v8, %v681_v12 }
 0x1c8   :  { %v684_v19 = vsel %vm680_vm6, %v675_v10, %v682_v17  ;;  %v685_v14 = vpack.c.bf16 %v683_v18, %v683_v18 }
 0x1c9   :  { %v686_v20 = vpack.c.bf16 %v684_v19, %v684_v19 }
 0x1cb   :  { %854 = vmatprep.mubr.bf16.mxu1 %v686_v20 }
 0x1cc   :  { %855 = vmatmul.mubr.bf16.vlgmr.msra.gmra.mrb[4].mxu1 %v685_v14 }
 0x29f   :  { %v977_v13 = vpop.f32.mrb[4].mxu1 }
 0x2a0   :  { %v978_v21 = vpop.f32.mrb[5].mxu1 }
 0x2a1   :  { %v979_v22 = vadd.f32 %v978_v21, %v977_v13  ;;  %v980_v23 = vpop.f32.mrb[6].mxu1 }
 0x2a2   :  { %v981_v24 = vpop.f32.mrb[7].mxu1 }
 0x2a3   :  { %v857_v25 = vadd.f32 %v979_v22, %v944_v16 }
 0x2a5   :  { %vm862_vm7 = vcmp.gt.f32.partialorder %v857_v25, 0.0  ;;  %v863_v26 = vmul.f32 0.01, %v857_v25 }
 0x2a7   :  { %v864_v27 = vsel %vm862_vm7, %v857_v25, %v863_v26 }
 0x2a8   :  { %865 = vst [vmem:[%s1455_s7] sm:$0xff] %v864_v27 }

</bundles_post_ra>
